<compile_context>
chip_gen: v7x
topology: tpu7x:2x2x1
jax: 0.10.0
libtpu: 0.0.40
codegen_flags: <defaults>
</compile_context>

<pallas_src>
import functools

import jax
import jax.numpy as jnp
from jax import lax
from jax.experimental import pallas as pl
from jax.experimental.pallas import tpu as pltpu


def _round_up(a: int, b: int) -> int:
    return (a + b - 1) // b * b


def _vmem_capacity_bytes() -> int:
    try:
        return int(pltpu.get_tpu_info().vmem_capacity_bytes)
    except Exception:
        return 64 << 20  # conservative fallback: v7x per-TC physical VMEM


# ----------------------------------------------------------------------------
# Kernels
# ----------------------------------------------------------------------------
def _lmhead_kernel_fused(x_ref, w_ref, b_ref, o_ref):
    """Single-K tile: o = x @ w.T + b, fused, no accumulator scratch.

    x_ref: (tm, d_model)   w_ref: (tn, d_model)   b_ref: (1, tn)   o_ref: (tm, tn)
    """
    acc = lax.dot_general(
        x_ref[...],
        w_ref[...],
        dimension_numbers=(((1,), (1,)), ((), ())),
        preferred_element_type=jnp.float32,
    )
    o_ref[...] = (acc + b_ref[...].astype(jnp.float32)).astype(o_ref.dtype)


def _lmhead_kernel_acc(x_ref, w_ref, b_ref, o_ref, acc_ref):
    """K-tiled path: accumulate over the last grid axis; bias folded into init.

    x_ref: (tm, tk)  w_ref: (tn, tk)  b_ref: (1, tn)  o_ref/acc_ref: (tm, tn)
    """
    k = pl.program_id(2)

    @pl.when(k == 0)
    def _():
        # Bias folded into the accumulator init: no separate epilogue add.
        acc_ref[...] = jnp.broadcast_to(
            b_ref[...].astype(jnp.float32), acc_ref.shape
        )

    acc_ref[...] += lax.dot_general(
        x_ref[...],
        w_ref[...],
        dimension_numbers=(((1,), (1,)), ((), ())),
        preferred_element_type=jnp.float32,
    )

    @pl.when(k == pl.num_programs(2) - 1)
    def _():
        o_ref[...] = acc_ref[...].astype(o_ref.dtype)


# ----------------------------------------------------------------------------
# One-time parameter prep (model-init time; never in the per-call path)
# ----------------------------------------------------------------------------
def prepare_lmhead_params(weight, bias, *, compute_dtype=jnp.bfloat16, tn_cap=2048):
    """Cast + pad the weight once, outside the per-call jitted forward.

    weight: (n_output, d_model) in PyTorch nn.Linear layout (used untransposed).
    bias:   (n_output,)
    Returns (weight_p, bias_p): weight_p is (n_pad, d_model) in compute_dtype,
    bias_p is (1, n_pad) float32. n_pad is lane-aligned and yields >= 2 n tiles
    (megacore sharding of the outer grid axis) whenever the vocab allows it.
    """
    n_output, d_model = weight.shape
    n128 = _round_up(n_output, 128)
    if n128 < 256:
        n_pad = n128                                  # too small to split
    elif n128 <= 2 * tn_cap:
        n_pad = 2 * _round_up(n128 // 2, 128)         # exactly 2 n tiles
    else:
        n_pad = _round_up(n128, 1024)                 # many lane-aligned tiles

    if compute_dtype is not None:
        weight = weight.astype(compute_dtype)
    bias2d = bias.astype(jnp.float32).reshape(1, n_output)
    if n_pad != n_output:
        weight = jnp.pad(weight, ((0, n_pad - n_output), (0, 0)))
        bias2d = jnp.pad(bias2d, ((0, 0), (0, n_pad - n_output)))
    return weight, bias2d


# ----------------------------------------------------------------------------
# Tile selection (trace time, all static)
# ----------------------------------------------------------------------------
def _select_tiles(m, n_pad, d_model, in_item, out_item, vmem_budget, tm_req, tn_cap):
    sublane = {4: 8, 2: 16, 1: 32}.get(in_item, 8)
    tm = min(_round_up(tm_req, sublane), _round_up(m, sublane))

    def tile_bytes(tm_, tn_, tk_, k_steps):
        return (
            2 * tm_ * tk_ * in_item        # x tile, double-buffered
            + 2 * tn_ * tk_ * in_item      # weight tile, double-buffered
            + 2 * tm_ * tn_ * out_item     # output tile, double-buffered
            + 2 * tn_ * 4                  # bias slice
            + (tm_ * tn_ * 4 if k_steps > 1 else 0)  # f32 accumulator scratch
        )

    # Largest lane-aligned tn dividing n_pad, capped, leaving >= 2 n tiles
    # when the (padded) vocab allows it.
    tn_limit = max(min(tn_cap, n_pad if n_pad < 256 else n_pad // 2), 128)
    tn = 128
    for cand in range(tn_limit - tn_limit % 128, 127, -128):
        if n_pad % cand == 0:
            tn = cand
            break

    # Prefer full-K residency (weight streams from HBM exactly once):
    # shrink tn before ever tiling K.
    while tile_bytes(tm, tn, d_model, 1) > vmem_budget:
        if tn % 256 == 0 and n_pad % (tn // 2) == 0:
            tn //= 2
        else:
            break
    if tile_bytes(tm, tn, d_model, 1) <= vmem_budget:
        return tm, tn, d_model, 1, tile_bytes(tm, tn, d_model, 1)

    # Fall back to K tiling (keeps d_model % tk == 0 and tk lane-aligned).
    tk = d_model
    while (
        tk % 2 == 0
        and (tk // 2) % 128 == 0
        and tile_bytes(tm, tn, tk, 2) > vmem_budget
    ):
        tk //= 2
    k_steps = d_model // tk
    return tm, tn, tk, k_steps, tile_bytes(tm, tn, tk, k_steps)


# ----------------------------------------------------------------------------
# Forward
# ----------------------------------------------------------------------------
@functools.partial(jax.jit, static_argnames=("n_output", "tm", "tn_cap", "tk"))
def lmhead_forward(x, weight_p, bias_p, *, n_output, tm=None, tn_cap=None, tk=None):
    """y = x @ W.T + b with W/b pre-prepared by prepare_lmhead_params.

    x:        (..., d_model)
    weight_p: (n_pad, d_model), pre-cast, vocab pre-padded
    bias_p:   (1, n_pad) float32
    n_output: original (unpadded) output size
    tk:       optional explicit K tile (must divide d_model); mainly for tests.
    """
    d_model = x.shape[-1]
    n_pad = weight_p.shape[0]
    assert weight_p.shape[1] == d_model
    lead_shape = x.shape[:-1]
    out_dtype = x.dtype

    if x.dtype != weight_p.dtype:
        x = x.astype(weight_p.dtype)   # activations are small; in-graph cast is cheap

    x2d = x.reshape(-1, d_model)
    m = x2d.shape[0]

    in_item = jnp.dtype(weight_p.dtype).itemsize
    out_item = jnp.dtype(out_dtype).itemsize

    vmem_cap = _vmem_capacity_bytes()
    vmem_budget = max(vmem_cap - (16 << 20), 24 << 20)   # leave compiler headroom
    if tn_cap is None:
        tn_cap = 2048 if vmem_cap >= (96 << 20) else 1024
    if tm is None:
        tm = 512 if vmem_cap >= (96 << 20) else 256

    tm_eff, tn_eff, tk_eff, k_steps, tile_bytes = _select_tiles(
        m, n_pad, d_model, in_item, out_item, vmem_budget, tm, tn_cap
    )

    # Optional explicit K tile override (used to exercise the accumulator path).
    if tk is not None and d_model % tk == 0 and (tk == d_model or tk % 128 == 0):
        tk_eff = tk
        k_steps = d_model // tk

    m_pad = _round_up(m, tm_eff)
    if m_pad != m:
        x2d = jnp.pad(x2d, ((0, m_pad - m), (0, 0)))

    n_tiles = n_pad // tn_eff
    m_tiles = m_pad // tm_eff

    # Advisory cost estimate: weight streams once when K is fully resident,
    # otherwise once per m tile; x streams once per n tile.
    w_reads = 1 if k_steps == 1 else m_tiles
    cost = pl.CostEstimate(
        flops=2 * m_pad * n_pad * d_model,
        transcendentals=0,
        bytes_accessed=(
            n_pad * d_model * in_item * w_reads
            + m_pad * d_model * in_item * n_tiles
            + m_pad * n_pad * out_item
            + n_pad * 4
        ),
    )

    vmem_limit = min(max(tile_bytes + (4 << 20), 32 << 20), vmem_cap - (8 << 20))

    if k_steps == 1:
        out2d = pl.pallas_call(
            _lmhead_kernel_fused,
            out_shape=jax.ShapeDtypeStruct((m_pad, n_pad), out_dtype),
            grid_spec=pltpu.PrefetchScalarGridSpec(
                num_scalar_prefetch=0,
                grid=(n_tiles, m_tiles),
                in_specs=[
                    pl.BlockSpec((tm_eff, tk_eff), lambda n, i: (i, 0)),   # x rows
                    pl.BlockSpec((tn_eff, tk_eff), lambda n, i: (n, 0)),   # W (torch layout)
                    pl.BlockSpec((1, tn_eff), lambda n, i: (0, n)),        # bias
                ],
                out_specs=pl.BlockSpec((tm_eff, tn_eff), lambda n, i: (i, n)),
            ),
            compiler_params=pltpu.CompilerParams(
                dimension_semantics=("parallel", "parallel"),
                vmem_limit_bytes=vmem_limit,
            ),
            cost_estimate=cost,
        )(x2d, weight_p, bias_p)
    else:
        out2d = pl.pallas_call(
            _lmhead_kernel_acc,
            out_shape=jax.ShapeDtypeStruct((m_pad, n_pad), out_dtype),
            grid_spec=pltpu.PrefetchScalarGridSpec(
                num_scalar_prefetch=0,
                grid=(n_tiles, m_tiles, k_steps),
                in_specs=[
                    pl.BlockSpec((tm_eff, tk_eff), lambda n, i, k: (i, k)),
                    pl.BlockSpec((tn_eff, tk_eff), lambda n, i, k: (n, k)),
                    pl.BlockSpec((1, tn_eff), lambda n, i, k: (0, n)),
                ],
                out_specs=pl.BlockSpec((tm_eff, tn_eff), lambda n, i, k: (i, n)),
                scratch_shapes=[pltpu.VMEM((tm_eff, tn_eff), jnp.float32)],
            ),
            compiler_params=pltpu.CompilerParams(
                dimension_semantics=("parallel", "parallel", "arbitrary"),
                vmem_limit_bytes=vmem_limit,
            ),
            cost_estimate=cost,
        )(x2d, weight_p, bias_p)

    out2d = out2d[:m, :n_output]
    return out2d.reshape(*lead_shape, n_output)


# ----------------------------------------------------------------------------
# Self-test
# ----------------------------------------------------------------------------
if __name__ == "__main__":
    key = jax.random.PRNGKey(0)

    # ---- Case 1: f32 path, small module-consistent shapes -------------------
    batch, seq, d_model, n_output = 2, 8, 32, 128
    kx, kw, kb, kx2, kw2, kb2, kx3 = jax.random.split(key, 7)

    bound = 1.0 / (d_model ** 0.5)
    weight = jax.random.uniform(kw, (n_output, d_model), jnp.float32, -bound, bound)
    bias = jax.random.uniform(kb, (n_output,), jnp.float32, -bound, bound)
    x = jax.random.normal(kx, (batch, seq, d_model), jnp.float32)

    w_f32, b_f32 = prepare_lmhead_params(weight, bias, compute_dtype=jnp.float32)
    y = jax.block_until_ready(lmhead_forward(x, w_f32, b_f32, n_output=n_output))
    y_ref = x @ weight.T + bias
    assert y.shape == (batch, seq, n_output)
    assert jnp.allclose(y, y_ref, atol=1e-5, rtol=1e-5), "f32 mismatch vs reference"

    # ---- Case 2: default bf16 weight path (f32 accumulation) ----------------
    w_bf16, b_bf16 = prepare_lmhead_params(weight, bias)  # compute_dtype=bf16
    y_bf16 = jax.block_until_ready(lmhead_forward(x, w_bf16, b_bf16, n_output=n_output))
    assert y_bf16.shape == (batch, seq, n_output)
    assert jnp.allclose(y_bf16, y_ref, atol=3e-2, rtol=3e-2), "bf16 mismatch vs reference"

    # ---- Case 3: decode-style ragged row count (m padding path) -------------
    x_dec = jax.random.normal(kx2, (1, 3, d_model), jnp.float32)
    y_dec = jax.block_until_ready(lmhead_forward(x_dec, w_f32, b_f32, n_output=n_output))
    y_dec_ref = x_dec @ weight.T + bias
    assert y_dec.shape == (1, 3, n_output)
    assert jnp.allclose(y_dec, y_dec_ref, atol=1e-5, rtol=1e-5), "decode mismatch"

    # ---- Case 4: K-tiled accumulator kernel + prep-time vocab padding -------
    d_model2, n_output2 = 256, 384
    bound2 = 1.0 / (d_model2 ** 0.5)
    weight2 = jax.random.uniform(kw2, (n_output2, d_model2), jnp.float32, -bound2, bound2)
    bias2 = jax.random.uniform(kb2, (n_output2,), jnp.float32, -bound2, bound2)
    x2 = jax.random.normal(kx3, (2, 8, d_model2), jnp.float32)

    w2_p, b2_p = prepare_lmhead_params(weight2, bias2, compute_dtype=jnp.float32)
    y2 = jax.block_until_ready(
        lmhead_forward(x2, w2_p, b2_p, n_output=n_output2, tk=128)  # force 2 K steps
    )
    y2_ref = x2 @ weight2.T + bias2
    assert y2.shape == (2, 8, n_output2)
    assert jnp.allclose(y2, y2_ref, atol=1e-5, rtol=1e-5), "K-tiled mismatch"

    print("KERNEL_OK")
</pallas_src>

<mosaic_0001>
module attributes {stable_mosaic.version = 11 : i64} {
  func.func @_lmhead_kernel_fused(%arg0: i32, %arg1: i32, %arg2: memref<16x32xf32, #tpu.memory_space<vmem>>, %arg3: memref<128x32xf32, #tpu.memory_space<vmem>>, %arg4: memref<1x128xf32, #tpu.memory_space<vmem>>, %arg5: memref<16x128xf32, #tpu.memory_space<vmem>>) attributes {dimension_semantics = [#tpu.dimension_semantics<parallel>, #tpu.dimension_semantics<parallel>], iteration_bounds = array<i64: 1, 1>, scalar_prefetch = 0 : i64, scratch_operands = 0 : i64, tpu.core_type = #tpu.core_type<tc>, window_params = [{transform_indices = @transform_0, window_bounds = array<i64: 16, 32>}, {transform_indices = @transform_1, window_bounds = array<i64: 128, 32>}, {transform_indices = @transform_2, window_bounds = array<i64: 1, 128>}, {transform_indices = @transform_3, window_bounds = array<i64: 16, 128>}]} {
    %c0 = arith.constant 0 : index
    %c0_0 = arith.constant 0 : index
    %0 = vector.load %arg2[%c0, %c0_0] : memref<16x32xf32, #tpu.memory_space<vmem>>, vector<16x32xf32>
    %c0_1 = arith.constant 0 : index
    %c0_2 = arith.constant 0 : index
    %1 = vector.load %arg3[%c0_1, %c0_2] : memref<128x32xf32, #tpu.memory_space<vmem>>, vector<128x32xf32>
    %cst = arith.constant dense<0.000000e+00> : vector<16x128xf32>
    %2 = tpu.matmul %0, %1, %cst {dimension_numbers = #tpu.dot_dimension_numbers<[1], [1], [0], [0], [0, 0, 1, 0], [], []>} : vector<16x32xf32>, vector<128x32xf32>, vector<16x128xf32> -> vector<16x128xf32>
    %c0_3 = arith.constant 0 : index
    %c0_4 = arith.constant 0 : index
    %3 = vector.load %arg4[%c0_3, %c0_4] : memref<1x128xf32, #tpu.memory_space<vmem>>, vector<1x128xf32>
    %4 = vector.broadcast %3 : vector<1x128xf32> to vector<16x128xf32>
    %5 = arith.addf %2, %4 : vector<16x128xf32>
    %c0_5 = arith.constant 0 : index
    %c0_6 = arith.constant 0 : index
    %6 = vector.load %arg5[%c0_5, %c0_6] : memref<16x128xf32, #tpu.memory_space<vmem>>, vector<16x128xf32>
    tpu.vector_store %arg5[%c0_5, %c0_6], %5 {strides = array<i32>} : memref<16x128xf32, #tpu.memory_space<vmem>>, vector<16x128xf32>,
    return
  }
  func.func @transform_0(%arg0: i32, %arg1: i32) -> (i32, i32) {
    %c0_i32 = arith.constant 0 : i32
    %c0_i32_0 = arith.constant 0 : i32
    return %arg1, %c0_i32 : i32, i32
  }
  func.func @transform_1(%arg0: i32, %arg1: i32) -> (i32, i32) {
    %c0_i32 = arith.constant 0 : i32
    %c0_i32_0 = arith.constant 0 : i32
    return %arg0, %c0_i32 : i32, i32
  }
  func.func @transform_2(%arg0: i32, %arg1: i32) -> (i32, i32) {
    %c0_i32 = arith.constant 0 : i32
    %c0_i32_0 = arith.constant 0 : i32
    return %c0_i32, %arg0 : i32, i32
  }
  func.func @transform_3(%arg0: i32, %arg1: i32) -> (i32, i32) {
    %c0_i32 = arith.constant 0 : i32
    return %arg1, %arg0 : i32, i32
  }
}

</mosaic_0001>

<bundles_post_ra>
// kernel: lmhead_forward.1
= control target key start
LH: loop header
LB: loop body
LE: loop exit
PB: predicated region body
PF: predicated region fallthrough
CT: control target
= control target key end

     0   :  { %vm40_vm0 = vcmask 261120   ;;  %s467_s0 = inlined_call_operand.vmem [shape: f32[16,32], index: 0, kind: input, shape index: {}]   ;;  %s468_s1 = inlined_call_operand.vmem [shape: f32[128,32], index: 1, kind: input, shape index: {}]   ;;  %s469_s2 = inlined_call_operand.vmem [shape: f32[1,128], index: 2, kind: input, shape index: {}]   ;;  %s470_s3 = inlined_call_operand.hbm [shape: f32[16,128], index: 3, kind: output, shape index: {}]  }
   0x1   :  { %v17_v0 = vld [vmem:[%s468_s1] sm:$0xff]  ;;  %v18_v1 = vld [vmem:[%s468_s1 + $0x8] sm:$0xff]  ;;  %v19_v2 = vld [vmem:[%s468_s1 + $0x10] sm:$0xff] }
   0x2   :  { %v260_v3 = vpack.c.bf16 %v18_v1, %v17_v0  ;;  %vm369_vm1 = vmpackc.low %vm40_vm0, %vm40_vm0  ;;  %v20_v5 = vld [vmem:[%s468_s1 + $0x18] sm:$0xff]  ;;  %v15_v7 = vld [vmem:[%s467_s0] sm:$0xff] }
   0x3   :  { %v266_v6 = vpack.c.bf16 %v20_v5, %v19_v2  ;;  %v21_v8 = vld [vmem:[%s468_s1 + $0x20] sm:$0xff]  ;;  %v22_v9 = vld [vmem:[%s468_s1 + $0x28] sm:$0xff]  ;;  %257 = vmatprep.mubr.msk.f32.mxu0 %vm40_vm0, %v15_v7 }
   0x4   :  { %262 = vmatprep.subr.msk.bf16.mxu0 %vm369_vm1, %v260_v3 }
   0x5   :  { %265 = vmatpush3.bf16.xpose.msk.msra.mxu0 %vm369_vm1, %v260_v3 }
   0x6   :  { %268 = vmatprep.subr.msk.bf16.mxu0 %vm369_vm1, %v266_v6 }
   0x7   :  { %8 = vsyncpa [#allocation3], 0  ;;  %v272_v10 = vpack.c.bf16 %v22_v9, %v21_v8  ;;  %v23_v11 = vld [vmem:[%s468_s1 + $0x30] sm:$0xff]  ;;  %v24_v12 = vld [vmem:[%s468_s1 + $0x38] sm:$0xff] }
   0x8   :  { %v278_v13 = vpack.c.bf16 %v24_v12, %v23_v11  ;;  %v25_v14 = vld [vmem:[%s468_s1 + $0x40] sm:$0xff]  ;;  %v26_v15 = vld [vmem:[%s468_s1 + $0x48] sm:$0xff]  ;;  %v27_v17 = vld [vmem:[%s468_s1 + $0x50] sm:$0xff] }
   0x9   :  { %v284_v16 = vpack.c.bf16 %v26_v15, %v25_v14  ;;  %v28_v18 = vld [vmem:[%s468_s1 + $0x58] sm:$0xff]  ;;  %v29_v20 = vld [vmem:[%s468_s1 + $0x60] sm:$0xff]  ;;  %v30_v21 = vld [vmem:[%s468_s1 + $0x68] sm:$0xff] }
   0xa   :  { %v290_v19 = vpack.c.bf16 %v28_v18, %v27_v17  ;;  %v296_v22 = vpack.c.bf16 %v30_v21, %v29_v20  ;;  %v31_v23 = vld [vmem:[%s468_s1 + $0x70] sm:$0xff]  ;;  %v32_v24 = vld [vmem:[%s468_s1 + $0x78] sm:$0xff]  ;;  %v16_v26 = vld [vmem:[%s467_s0 + $0x8] sm:$0xff]  ;;  %s335_s1 = smov [#allocation2]  }
   0xb   :  { %v302_v25 = vpack.c.bf16 %v32_v24, %v31_v23  ;;  %v188_v27 = vld [vmem:[%s469_s2] ss:$0 sm:$0xff]  ;;  %s177_s23 = sshll.u32 %s335_s1, 4  ;;  %s178_s23 = int_to_ptr.vmem [resolvable:$true] %s177_s23 }
   0xc   :  { %s311_s24 = scalar_lea.vmem %s178_s23, 256  ;;  %p316_p1 = scmp.lt.s32.totalorder %s178_s23, %s178_s23 }
   0xd   :  { %271 = vmatpush3.bf16.xpose.msk.msra.mxu0 %vm369_vm1, %v266_v6  ;;  %p312_p0 = scmp.ne.s32.totalorder %s178_s23, %s311_s24  ;;  %p317_p2 = scmp.lt.s32.totalorder %s311_s24, %s311_s24 }
   0xe   :  { %274 = vmatprep.subr.msk.bf16.mxu0 %vm369_vm1, %v272_v10 }
   0xf   :  { %p318_p3 = por %p317_p2, %p316_p1 }
  0x11   :  { %p319_p4 = pnand %p318_p3, %p312_p0 }
  0x15   :  { %277 = vmatpush3.bf16.xpose.msk.msra.mxu0 %vm369_vm1, %v272_v10 }
  0x16   :  { %280 = vmatprep.subr.msk.bf16.mxu0 %vm369_vm1, %v278_v13 }
  0x1d   :  { %283 = vmatpush3.bf16.xpose.msk.msra.mxu0 %vm369_vm1, %v278_v13 }
  0x1e   :  { %286 = vmatprep.subr.msk.bf16.mxu0 %vm369_vm1, %v284_v16 }
  0x25   :  { %289 = vmatpush3.bf16.xpose.msk.msra.mxu0 %vm369_vm1, %v284_v16 }
  0x26   :  { %292 = vmatprep.subr.msk.bf16.mxu0 %vm369_vm1, %v290_v19 }
  0x2d   :  { %295 = vmatpush3.bf16.xpose.msk.msra.mxu0 %vm369_vm1, %v290_v19 }
  0x2e   :  { %298 = vmatprep.subr.msk.bf16.mxu0 %vm369_vm1, %v296_v22 }
  0x35   :  { %301 = vmatpush3.bf16.xpose.msk.msra.mxu0 %vm369_vm1, %v296_v22 }
  0x36   :  { %304 = vmatprep.subr.msk.bf16.mxu0 %vm369_vm1, %v302_v25 }
  0x3d   :  { %307 = vmatpush3.bf16.xpose.msk.msra.mxu0 %vm369_vm1, %v302_v25 }
  0x44   :  { %258 = vmatmul.mubr.msk.f32.vlgmr.msra.gmra.mrb[0].mxu0 %vm40_vm0, %v16_v26 }
 0x117   :  { %v259_v28 = vpop.f32.mrb[0].mxu0 }
 0x118   :  { %v167_v29 = vadd.f32 %v259_v28, %v188_v27  ;;  %v161_v30 = vpop.f32.mrb[1].mxu0 }
 0x119   :  { %v162_v31 = vadd.f32 %v188_v27, %v161_v30 }
 0x11a   :  { %171 = vst [vmem:[#allocation2 + $0x8] sm:$0xff] %v167_v29 }
 0x11b   :  { %170 = vst [vmem:[#allocation2] sm:$0xff] %v162_v31 }
 0x11c   :  { %322 = shalt.err (!%p319_p4)
}
 0x11d   :  { %s323_s2 = scalar_lea.hbm %s470_s3, 256 }
 0x11e   :  { %p324_p5 = scmp.ne.s32.totalorder %s470_s3, %s323_s2  ;;  %p327_p6 = scmp.lt.u32.totalorder %s323_s2, %s470_s3 }
 0x120   :  { %p329_p7 = pnand %p327_p6, %p324_p5 }
 0x122   :  { %332 = shalt.err (!%p329_p7)
}
 0x123   :  { %s336_s30 = smov 128   ;;  %s337_s4 = smov 8  }
 0x124   :  { %183 = dma.vmem_to_hbm [thread:$0]  %s178_s23, 256, %s470_s3, [#allocation3], %s336_s30, %s336_s30, %s337_s4  }
 0x125   :  { %333 = dma.done.wait [#allocation3], 256  }
 0x126   :  { %334 = vsyncadd [#allocation3], 4294967040 }
 0x127   :  { %187 = vsyncpa [#allocation3], 1 }

</bundles_post_ra>
